<compile_context>
chip_gen: v7x
topology: tpu7x:2x2x1
jax: 0.10.0
libtpu: 0.0.40
codegen_flags: <defaults>
</compile_context>

<pallas_src>
import math
from functools import partial

import jax
import jax.numpy as jnp
from jax.experimental import pallas as pl
from jax.experimental.pallas import tpu as pltpu


def imha_kernel(q_ref, k_ref, v_ref,
                wq_ref, bq_ref, wk_ref, bk_ref, wv_ref, bv_ref, wh_ref,
                out_ref, attn_ref, ks_scr, vs_scr,
                *, n_head, d_k, sk, approx_recip):
    cdt = ks_scr.dtype                       # MXU input dtype (bf16 fast path)

    # K/V projections do not depend on the q tile: compute them once per batch
    # into persistent VMEM scratch (q-tile grid axis is "arbitrary").
    @pl.when(pl.program_id(1) == 0)
    def _():
        kb = k_ref[0].astype(cdt)            # (Sk, D)
        vb = v_ref[0].astype(cdt)            # (Sk, D)
        ks = jnp.dot(kb, wk_ref[...], preferred_element_type=jnp.float32) + bk_ref[...]
        vs = jnp.dot(vb, wv_ref[...], preferred_element_type=jnp.float32) + bv_ref[...]
        ks_scr[...] = ks.astype(cdt)
        vs_scr[...] = vs.astype(cdt)

    # Fused all-head Q projection: one MXU pass instead of n_head.
    qb = q_ref[0].astype(cdt)                # (tq, D)
    qs = (jnp.dot(qb, wq_ref[...], preferred_element_type=jnp.float32)
          + bq_ref[...]).astype(cdt)         # (tq, H*d_k)
    ks = ks_scr[...]                         # (Sk, H*d_k)
    vs = vs_scr[...]                         # (Sk, d_v)

    scale = 1.0 / math.sqrt(d_k)
    attn_sum = jnp.zeros((qs.shape[0], sk), jnp.float32)

    # TODO(synk): mask / prior_info / dropout>0 branches of ScaledDotProductAttention
    # are not implemented (the module's default forward passes None/None, p=0.0).
    for h in range(n_head):                  # static unroll; n_head is small
        qh = qs[:, h * d_k:(h + 1) * d_k]    # (tq, d_k)
        kh = ks[:, h * d_k:(h + 1) * d_k]    # (Sk, d_k)
        logits = jnp.dot(qh, kh.T, preferred_element_type=jnp.float32) * scale
        m = jnp.max(logits, axis=-1, keepdims=True)
        e = jnp.exp(logits - m)              # EUP slot
        inv = pl.reciprocal(jnp.sum(e, axis=-1, keepdims=True), approx=approx_recip)
        p = e * inv                          # per-row reciprocal + multiply (no divide)
        # Lane-offset store into the (tq, H*Sk) slab: attn leaves the kernel in
        # its final layout, no wrapper transpose needed.
        attn_ref[0, :, h * sk:(h + 1) * sk] = p.astype(attn_ref.dtype)
        attn_sum = attn_sum + p

    # mean_h(attn_h @ vs) == (mean_h attn_h) @ vs since vs is shared by all heads;
    # the 1/n_head factor is folded into wh at init.
    head = jnp.dot(attn_sum.astype(cdt), vs, preferred_element_type=jnp.float32)
    out = jnp.dot(head.astype(cdt), wh_ref[...], preferred_element_type=jnp.float32)
    # Dropout p=0.0 -> identity (matches module default / eval mode).
    out_ref[0, :, :] = out.astype(out_ref.dtype)


def make_params(q_w, q_b, k_w, k_b, v_w, v_b, h_w, *,
                compute_dtype=jnp.bfloat16, attn_dtype=jnp.bfloat16):
    """One-time conversion of PyTorch-layout parameters to the fused kernel layout.

    q_w/k_w: (n_head, d_k, d_model) per-head nn.Linear weights (out, in)
    q_b/k_b: (n_head, d_k)
    v_w: (d_v, d_model), v_b: (d_v,)
    h_w: (d_model, d_v)             w_h weight (bias=False)
    """
    n_head, d_k, d_model = q_w.shape
    wq = jnp.transpose(q_w, (2, 0, 1)).reshape(d_model, n_head * d_k)
    wk = jnp.transpose(k_w, (2, 0, 1)).reshape(d_model, n_head * d_k)
    return dict(
        n_head=n_head, d_k=d_k,
        compute_dtype=jnp.dtype(compute_dtype), attn_dtype=jnp.dtype(attn_dtype),
        wq=wq.astype(compute_dtype), bq=q_b.reshape(1, n_head * d_k).astype(jnp.float32),
        wk=wk.astype(compute_dtype), bk=k_b.reshape(1, n_head * d_k).astype(jnp.float32),
        wv=v_w.T.astype(compute_dtype), bv=v_b.reshape(1, -1).astype(jnp.float32),
        # 1/n_head folded into the output projection (saves a (tq,Sk) VPU multiply/step)
        wh=(h_w.T / n_head).astype(compute_dtype),
    )


def _plan_tiles(Sq, Sk, D, hdk, d_v, n_head, cdt_bytes, attn_bytes, block_q):
    """Generation-aware q-tile size + vmem_limit_bytes (v7x 64 MiB vs v6e/v5e 128 MiB)."""
    try:
        info = pltpu.get_tpu_info()
        vmem_cap = int(getattr(info, "vmem_capacity_bytes", 0)) or (64 << 20)
    except Exception:
        vmem_cap = 64 << 20                    # conservative: v7x per-core physical
    budget = int(vmem_cap * 0.6)               # headroom for compiler temps / spills

    fixed = ((2 * D * hdk + D * d_v + d_v * D) * cdt_bytes   # wq, wk, wv, wh (resident)
             + (2 * hdk + d_v) * 4                            # f32 biases
             + 2 * 2 * Sk * D * 4                             # double-buffered k, v tiles
             + (Sk * hdk + Sk * d_v) * cdt_bytes)             # ks/vs scratch

    def per_step(tq):
        return (2 * tq * D * 4                                # q tile (double-buffered)
                + 2 * tq * D * 4                              # out tile
                + 2 * tq * n_head * Sk * attn_bytes           # attn slab (dominant)
                + 4 * tq * Sk * 4 + tq * hdk * 4)             # f32 temporaries

    tq = min(block_q, Sq)
    while tq > 8 and fixed + per_step(tq) > budget:
        tq //= 2
    # Legalize against the (8,128)/divisibility block constraints.
    if tq >= Sq:
        tq = Sq
    else:
        t = (tq // 8) * 8
        while t >= 8 and Sq % t != 0:
            t -= 8
        tq = t if t >= 8 else Sq

    vmem_limit = int(min(vmem_cap, max(fixed + per_step(tq) + (4 << 20), 32 << 20)))
    return tq, vmem_limit


def interpretable_mha_forward(params, q, k, v, *, block_q=512):
    B, Sq, D = q.shape
    _, Sk, _ = k.shape
    n_head, d_k = params["n_head"], params["d_k"]
    cdt, adt = params["compute_dtype"], params["attn_dtype"]
    d_v = params["wv"].shape[1]
    hdk = n_head * d_k

    tq, vmem_limit = _plan_tiles(Sq, Sk, D, hdk, d_v, n_head,
                                 cdt.itemsize, adt.itemsize, block_q)
    grid = (B, Sq // tq)
    approx_recip = cdt != jnp.dtype(jnp.float32)

    def _resident(shape):
        # Grid-invariant operand: VMEM-resident, single-buffered (index never changes).
        zeros = (0,) * len(shape)
        return pl.BlockSpec(shape, lambda b, i: zeros, pipeline_mode=pl.Buffered(1))

    # TODO(synk): if B == 1 on v7x, split the q-tile axis into an outer parallel
    # axis of extent 2 to keep both TensorCores busy.
    out, attn = pl.pallas_call(
        partial(imha_kernel, n_head=n_head, d_k=d_k, sk=Sk, approx_recip=approx_recip),
        out_shape=(
            jax.ShapeDtypeStruct((B, Sq, D), q.dtype),
            jax.ShapeDtypeStruct((B, Sq, n_head * Sk), adt),   # final layout, lane-dense
        ),
        grid_spec=pltpu.PrefetchScalarGridSpec(
            num_scalar_prefetch=0,
            grid=grid,
            in_specs=[
                pl.BlockSpec((1, tq, D), lambda b, i: (b, i, 0)),   # q tile
                pl.BlockSpec((1, Sk, D), lambda b, i: (b, 0, 0)),   # k (full seq, per batch)
                pl.BlockSpec((1, Sk, D), lambda b, i: (b, 0, 0)),   # v (full seq, per batch)
                _resident((D, hdk)),                                # Wq (all heads)
                _resident((1, hdk)),                                # bq (all heads)
                _resident((D, hdk)),                                # Wk (all heads)
                _resident((1, hdk)),                                # bk (all heads)
                _resident((D, d_v)),                                # Wv
                _resident((1, d_v)),                                # bv
                _resident((d_v, D)),                                # Wh (already / n_head)
            ],
            out_specs=(
                pl.BlockSpec((1, tq, D), lambda b, i: (b, i, 0)),
                pl.BlockSpec((1, tq, n_head * Sk), lambda b, i: (b, i, 0)),
            ),
            scratch_shapes=[
                pltpu.VMEM((Sk, hdk), cdt),     # ks, cached per batch
                pltpu.VMEM((Sk, d_v), cdt),     # vs, cached per batch
            ],
        ),
        compiler_params=pltpu.CompilerParams(
            dimension_semantics=("parallel", "arbitrary"),
            vmem_limit_bytes=vmem_limit),
    )(q, k, v, params["wq"], params["bq"], params["wk"], params["bk"],
      params["wv"], params["bv"], params["wh"])

    # Match torch.stack(attns, dim=2): (B, Sq, n_head, Sk). Row-major reshape is free.
    return out, attn.reshape(B, Sq, n_head, Sk)


def imha_reference(q, k, v, q_w, q_b, k_w, k_b, v_w, v_b, h_w):
    """Direct transcription of the PyTorch forward (mask=None, prior=None, p=0)."""
    n_head, d_k, _ = q_w.shape
    vs = jnp.einsum("bsd,od->bso", v, v_w) + v_b
    heads, attns = [], []
    for h in range(n_head):
        qs = jnp.einsum("bsd,od->bso", q, q_w[h]) + q_b[h]
        ks = jnp.einsum("bsd,od->bso", k, k_w[h]) + k_b[h]
        logits = jnp.einsum("bqo,bko->bqk", qs, ks) / jnp.sqrt(jnp.float32(d_k))
        attn = jax.nn.softmax(logits, axis=-1)
        heads.append(jnp.einsum("bqk,bko->bqo", attn, vs))
        attns.append(attn)
    head = jnp.stack(heads, axis=2)                 # (B, Sq, H, d_v)
    attn = jnp.stack(attns, axis=2)                 # (B, Sq, H, Sk)
    out = jnp.mean(head, axis=2) @ h_w.T            # (B, Sq, d_model)
    return out, attn


if __name__ == "__main__":
    n_head, d_model = 4, 32
    d_k = d_model // n_head                         # d_q = d_k = d_v = 8
    B, Sq, Sk = 2, 8, 8

    key = jax.random.PRNGKey(0)
    keys = jax.random.split(key, 10)
    xavier = 1.0 / math.sqrt(d_model)

    q = jax.random.normal(keys[0], (B, Sq, d_model), dtype=jnp.float32)
    k = jax.random.normal(keys[1], (B, Sk, d_model), dtype=jnp.float32)
    v = jax.random.normal(keys[2], (B, Sk, d_model), dtype=jnp.float32)

    # Synthetic parameters in PyTorch nn.Linear layout (out_features, in_features);
    # small nonzero biases so the bias path is exercised.
    q_w = jax.random.normal(keys[3], (n_head, d_k, d_model), jnp.float32) * xavier
    q_b = jax.random.normal(keys[4], (n_head, d_k), jnp.float32) * 0.1
    k_w = jax.random.normal(keys[5], (n_head, d_k, d_model), jnp.float32) * xavier
    k_b = jax.random.normal(keys[6], (n_head, d_k), jnp.float32) * 0.1
    v_w = jax.random.normal(keys[7], (d_k, d_model), jnp.float32) * xavier
    v_b = jax.random.normal(keys[8], (d_k,), jnp.float32) * 0.1
    h_w = jax.random.normal(keys[9], (d_model, d_k), jnp.float32) * xavier

    ref_out, ref_attn = imha_reference(q, k, v, q_w, q_b, k_w, k_b, v_w, v_b, h_w)

    # 1) Exactness check: f32 compute / f32 attn path must match the reference tightly.
    params_f32 = make_params(q_w, q_b, k_w, k_b, v_w, v_b, h_w,
                             compute_dtype=jnp.float32, attn_dtype=jnp.float32)
    out32, attn32 = jax.block_until_ready(interpretable_mha_forward(params_f32, q, k, v))
    assert out32.shape == (B, Sq, d_model), out32.shape
    assert attn32.shape == (B, Sq, n_head, Sk), attn32.shape
    assert jnp.allclose(out32, ref_out, atol=1e-4, rtol=1e-4), "f32 output mismatch"
    assert jnp.allclose(attn32, ref_attn, atol=1e-4, rtol=1e-4), "f32 attn mismatch"

    # 2) Fast path: bf16 MXU inputs + bf16 attn writeback (f32 accumulation/softmax).
    params = make_params(q_w, q_b, k_w, k_b, v_w, v_b, h_w)   # defaults: bf16/bf16
    out, attn = jax.block_until_ready(interpretable_mha_forward(params, q, k, v))
    assert out.shape == (B, Sq, d_model), out.shape
    assert attn.shape == (B, Sq, n_head, Sk), attn.shape
    assert jnp.allclose(out.astype(jnp.float32), ref_out, atol=7.5e-2, rtol=5e-2), \
        "bf16 output mismatch"
    assert jnp.allclose(attn.astype(jnp.float32), ref_attn, atol=7.5e-2), \
        "bf16 attn mismatch"

    print("KERNEL_OK")
</pallas_src>

<mosaic_0001>
module attributes {stable_mosaic.version = 11 : i64} {
  func.func @imha_kernel(%arg0: i32, %arg1: i32, %arg2: memref<1x8x32xf32, #tpu.memory_space<vmem>>, %arg3: memref<1x8x32xf32, #tpu.memory_space<vmem>>, %arg4: memref<1x8x32xf32, #tpu.memory_space<vmem>>, %arg5: memref<32x32xf32, #tpu.memory_space<vmem>>, %arg6: memref<1x32xf32, #tpu.memory_space<vmem>>, %arg7: memref<32x32xf32, #tpu.memory_space<vmem>>, %arg8: memref<1x32xf32, #tpu.memory_space<vmem>>, %arg9: memref<32x8xf32, #tpu.memory_space<vmem>>, %arg10: memref<1x8xf32, #tpu.memory_space<vmem>>, %arg11: memref<8x32xf32, #tpu.memory_space<vmem>>, %arg12: memref<1x8x32xf32, #tpu.memory_space<vmem>>, %arg13: memref<1x8x32xf32, #tpu.memory_space<vmem>>, %arg14: memref<8x32xf32, #tpu.memory_space<vmem>>, %arg15: memref<8x8xf32, #tpu.memory_space<vmem>>) attributes {dimension_semantics = [#tpu.dimension_semantics<parallel>, #tpu.dimension_semantics<arbitrary>], iteration_bounds = array<i64: 2, 1>, scalar_prefetch = 0 : i64, scratch_operands = 2 : i64, tpu.core_type = #tpu.core_type<tc>, window_params = [{transform_indices = @transform_0, window_bounds = array<i64: 1, 8, 32>}, {transform_indices = @transform_1, window_bounds = array<i64: 1, 8, 32>}, {transform_indices = @transform_2, window_bounds = array<i64: 1, 8, 32>}, {pipeline_mode = #tpu.pipeline_mode<synchronous>, transform_indices = @transform_3, window_bounds = array<i64: 32, 32>}, {pipeline_mode = #tpu.pipeline_mode<synchronous>, transform_indices = @transform_4, window_bounds = array<i64: 1, 32>}, {pipeline_mode = #tpu.pipeline_mode<synchronous>, transform_indices = @transform_5, window_bounds = array<i64: 32, 32>}, {pipeline_mode = #tpu.pipeline_mode<synchronous>, transform_indices = @transform_6, window_bounds = array<i64: 1, 32>}, {pipeline_mode = #tpu.pipeline_mode<synchronous>, transform_indices = @transform_7, window_bounds = array<i64: 32, 8>}, {pipeline_mode = #tpu.pipeline_mode<synchronous>, transform_indices = @transform_8, window_bounds = array<i64: 1, 8>}, {pipeline_mode = #tpu.pipeline_mode<synchronous>, transform_indices = @transform_9, window_bounds = array<i64: 8, 32>}, {transform_indices = @transform_10, window_bounds = array<i64: 1, 8, 32>}, {transform_indices = @transform_11, window_bounds = array<i64: 1, 8, 32>}]} {
    %c0_i32 = arith.constant 0 : i32
    %0 = arith.cmpi eq, %arg1, %c0_i32 : i32
    %1 = arith.extui %0 : i1 to i32
    %c0_i32_0 = arith.constant 0 : i32
    %2 = arith.cmpi ne, %1, %c0_i32_0 : i32
    scf.if %2 {
      %c0_44 = arith.constant 0 : index
      %c0_45 = arith.constant 0 : index
      %c0_46 = arith.constant 0 : index
      %99 = vector.load %arg3[%c0_44, %c0_45, %c0_46] : memref<1x8x32xf32, #tpu.memory_space<vmem>>, vector<1x8x32xf32>
      %100 = vector.shape_cast %99 : vector<1x8x32xf32> to vector<8x32xf32>
      %c0_47 = arith.constant 0 : index
      %c0_48 = arith.constant 0 : index
      %c0_49 = arith.constant 0 : index
      %101 = vector.load %arg4[%c0_47, %c0_48, %c0_49] : memref<1x8x32xf32, #tpu.memory_space<vmem>>, vector<1x8x32xf32>
      %102 = vector.shape_cast %101 : vector<1x8x32xf32> to vector<8x32xf32>
      %c0_50 = arith.constant 0 : index
      %c0_51 = arith.constant 0 : index
      %103 = vector.load %arg7[%c0_50, %c0_51] : memref<32x32xf32, #tpu.memory_space<vmem>>, vector<32x32xf32>
      %cst_52 = arith.constant dense<0.000000e+00> : vector<8x32xf32>
      %104 = tpu.matmul %100, %103, %cst_52 {dimension_numbers = #tpu.dot_dimension_numbers<[1], [0], [0], [1], [0, 0, 1, 1], [], []>} : vector<8x32xf32>, vector<32x32xf32>, vector<8x32xf32> -> vector<8x32xf32>
      %c0_53 = arith.constant 0 : index
      %c0_54 = arith.constant 0 : index
      %105 = vector.load %arg8[%c0_53, %c0_54] : memref<1x32xf32, #tpu.memory_space<vmem>>, vector<1x32xf32>
      %106 = vector.broadcast %105 : vector<1x32xf32> to vector<8x32xf32>
      %107 = arith.addf %104, %106 : vector<8x32xf32>
      %c0_55 = arith.constant 0 : index
      %c0_56 = arith.constant 0 : index
      %108 = vector.load %arg9[%c0_55, %c0_56] : memref<32x8xf32, #tpu.memory_space<vmem>>, vector<32x8xf32>
      %cst_57 = arith.constant dense<0.000000e+00> : vector<8x8xf32>
      %109 = tpu.matmul %102, %108, %cst_57 {dimension_numbers = #tpu.dot_dimension_numbers<[1], [0], [0], [1], [0, 0, 1, 1], [], []>} : vector<8x32xf32>, vector<32x8xf32>, vector<8x8xf32> -> vector<8x8xf32>
      %c0_58 = arith.constant 0 : index
      %c0_59 = arith.constant 0 : index
      %110 = vector.load %arg10[%c0_58, %c0_59] : memref<1x8xf32, #tpu.memory_space<vmem>>, vector<1x8xf32>
      %111 = vector.broadcast %110 : vector<1x8xf32> to vector<8x8xf32>
      %112 = arith.addf %109, %111 : vector<8x8xf32>
      %c0_60 = arith.constant 0 : index
      %c0_61 = arith.constant 0 : index
      %113 = vector.load %arg14[%c0_60, %c0_61] : memref<8x32xf32, #tpu.memory_space<vmem>>, vector<8x32xf32>
      tpu.vector_store %arg14[%c0_60, %c0_61], %107 {strides = array<i32>} : memref<8x32xf32, #tpu.memory_space<vmem>>, vector<8x32xf32>,
      %c0_62 = arith.constant 0 : index
      %c0_63 = arith.constant 0 : index
      %114 = vector.load %arg15[%c0_62, %c0_63] : memref<8x8xf32, #tpu.memory_space<vmem>>, vector<8x8xf32>
      tpu.vector_store %arg15[%c0_62, %c0_63], %112 {strides = array<i32>} : memref<8x8xf32, #tpu.memory_space<vmem>>, vector<8x8xf32>,
    } else {
    }
    %c0 = arith.constant 0 : index
    %c0_1 = arith.constant 0 : index
    %c0_2 = arith.constant 0 : index
    %3 = vector.load %arg2[%c0, %c0_1, %c0_2] : memref<1x8x32xf32, #tpu.memory_space<vmem>>, vector<1x8x32xf32>
    %4 = vector.shape_cast %3 : vector<1x8x32xf32> to vector<8x32xf32>
    %c0_3 = arith.constant 0 : index
    %c0_4 = arith.constant 0 : index
    %5 = vector.load %arg5[%c0_3, %c0_4] : memref<32x32xf32, #tpu.memory_space<vmem>>, vector<32x32xf32>
    %cst = arith.constant dense<0.000000e+00> : vector<8x32xf32>
    %6 = tpu.matmul %4, %5, %cst {dimension_numbers = #tpu.dot_dimension_numbers<[1], [0], [0], [1], [0, 0, 1, 1], [], []>} : vector<8x32xf32>, vector<32x32xf32>, vector<8x32xf32> -> vector<8x32xf32>
    %c0_5 = arith.constant 0 : index
    %c0_6 = arith.constant 0 : index
    %7 = vector.load %arg6[%c0_5, %c0_6] : memref<1x32xf32, #tpu.memory_space<vmem>>, vector<1x32xf32>
    %8 = vector.broadcast %7 : vector<1x32xf32> to vector<8x32xf32>
    %9 = arith.addf %6, %8 : vector<8x32xf32>
    %c0_7 = arith.constant 0 : index
    %c0_8 = arith.constant 0 : index
    %10 = vector.load %arg14[%c0_7, %c0_8] : memref<8x32xf32, #tpu.memory_space<vmem>>, vector<8x32xf32>
    %c0_9 = arith.constant 0 : index
    %c0_10 = arith.constant 0 : index
    %11 = vector.load %arg15[%c0_9, %c0_10] : memref<8x8xf32, #tpu.memory_space<vmem>>, vector<8x8xf32>
    %cst_11 = arith.constant 0.000000e+00 : f32
    %12 = vector.broadcast %cst_11 : f32 to vector<8x8xf32>
    %13 = vector.extract_strided_slice %9 {offsets = [0, 0], sizes = [8, 8], strides = [1, 1]} : vector<8x32xf32> to vector<8x8xf32>
    %14 = vector.extract_strided_slice %10 {offsets = [0, 0], sizes = [8, 8], strides = [1, 1]} : vector<8x32xf32> to vector<8x8xf32>
    %15 = tpu.transpose %14, [1, 0] : vector<8x8xf32> -> vector<8x8xf32>
    %cst_12 = arith.constant dense<0.000000e+00> : vector<8x8xf32>
    %16 = tpu.matmul %13, %15, %cst_12 {dimension_numbers = #tpu.dot_dimension_numbers<[1], [0], [0], [1], [0, 0, 1, 1], [], []>} : vector<8x8xf32>, vector<8x8xf32>, vector<8x8xf32> -> vector<8x8xf32>
    %cst_13 = arith.constant 0.353553385 : f32
    %17 = vector.broadcast %cst_13 : f32 to vector<8x8xf32>
    %18 = arith.mulf %16, %17 : vector<8x8xf32>
    %cst_14 = arith.constant dense<0xFF800000> : vector<8xf32>
    %19 = vector.multi_reduction <maximumf>, %18, %cst_14 [1] : vector<8x8xf32> to vector<8xf32>
    %20 = vector.shape_cast %19 : vector<8xf32> to vector<8x1xf32>
    %21 = vector.broadcast %20 : vector<8x1xf32> to vector<8x8xf32>
    %22 = arith.subf %18, %21 : vector<8x8xf32>
    %23 = math.exp %22 : vector<8x8xf32>
    %cst_15 = arith.constant dense<0.000000e+00> : vector<8xf32>
    %24 = vector.multi_reduction <add>, %23, %cst_15 [1] : vector<8x8xf32> to vector<8xf32>
    %25 = vector.shape_cast %24 : vector<8xf32> to vector<8x1xf32>
    %26 = tpu.reciprocal %25 : vector<8x1xf32> -> vector<8x1xf32>
    %27 = vector.broadcast %26 : vector<8x1xf32> to vector<8x8xf32>
    %28 = arith.mulf %23, %27 : vector<8x8xf32>
    %c0_16 = arith.constant 0 : index
    %c0_17 = arith.constant 0 : index
    %c0_18 = arith.constant 0 : index
    %29 = vector.load %arg13[%c0_16, %c0_17, %c0_18] : memref<1x8x32xf32, #tpu.memory_space<vmem>>, vector<1x8x8xf32>
    %30 = vector.shape_cast %29 : vector<1x8x8xf32> to vector<8x8xf32>
    %31 = vector.shape_cast %28 : vector<8x8xf32> to vector<1x8x8xf32>
    tpu.vector_store %arg13[%c0_16, %c0_17, %c0_18], %31 {strides = array<i32>} : memref<1x8x32xf32, #tpu.memory_space<vmem>>, vector<1x8x8xf32>,
    %32 = arith.addf %12, %28 : vector<8x8xf32>
    %33 = vector.extract_strided_slice %9 {offsets = [0, 8], sizes = [8, 8], strides = [1, 1]} : vector<8x32xf32> to vector<8x8xf32>
    %34 = vector.extract_strided_slice %10 {offsets = [0, 8], sizes = [8, 8], strides = [1, 1]} : vector<8x32xf32> to vector<8x8xf32>
    %35 = tpu.transpose %34, [1, 0] : vector<8x8xf32> -> vector<8x8xf32>
    %cst_19 = arith.constant dense<0.000000e+00> : vector<8x8xf32>
    %36 = tpu.matmul %33, %35, %cst_19 {dimension_numbers = #tpu.dot_dimension_numbers<[1], [0], [0], [1], [0, 0, 1, 1], [], []>} : vector<8x8xf32>, vector<8x8xf32>, vector<8x8xf32> -> vector<8x8xf32>
    %cst_20 = arith.constant 0.353553385 : f32
    %37 = vector.broadcast %cst_20 : f32 to vector<8x8xf32>
    %38 = arith.mulf %36, %37 : vector<8x8xf32>
    %cst_21 = arith.constant dense<0xFF800000> : vector<8xf32>
    %39 = vector.multi_reduction <maximumf>, %38, %cst_21 [1] : vector<8x8xf32> to vector<8xf32>
    %40 = vector.shape_cast %39 : vector<8xf32> to vector<8x1xf32>
    %41 = vector.broadcast %40 : vector<8x1xf32> to vector<8x8xf32>
    %42 = arith.subf %38, %41 : vector<8x8xf32>
    %43 = math.exp %42 : vector<8x8xf32>
    %cst_22 = arith.constant dense<0.000000e+00> : vector<8xf32>
    %44 = vector.multi_reduction <add>, %43, %cst_22 [1] : vector<8x8xf32> to vector<8xf32>
    %45 = vector.shape_cast %44 : vector<8xf32> to vector<8x1xf32>
    %46 = tpu.reciprocal %45 : vector<8x1xf32> -> vector<8x1xf32>
    %47 = vector.broadcast %46 : vector<8x1xf32> to vector<8x8xf32>
    %48 = arith.mulf %43, %47 : vector<8x8xf32>
    %c0_23 = arith.constant 0 : index
    %c0_24 = arith.constant 0 : index
    %c8 = arith.constant 8 : index
    %49 = vector.load %arg13[%c0_23, %c0_24, %c8] : memref<1x8x32xf32, #tpu.memory_space<vmem>>, vector<1x8x8xf32>
    %50 = vector.shape_cast %49 : vector<1x8x8xf32> to vector<8x8xf32>
    %51 = vector.shape_cast %48 : vector<8x8xf32> to vector<1x8x8xf32>
    tpu.vector_store %arg13[%c0_23, %c0_24, %c8], %51 {strides = array<i32>} : memref<1x8x32xf32, #tpu.memory_space<vmem>>, vector<1x8x8xf32>,
    %52 = arith.addf %32, %48 : vector<8x8xf32>
    %53 = vector.extract_strided_slice %9 {offsets = [0, 16], sizes = [8, 8], strides = [1, 1]} : vector<8x32xf32> to vector<8x8xf32>
    %54 = vector.extract_strided_slice %10 {offsets = [0, 16], sizes = [8, 8], strides = [1, 1]} : vector<8x32xf32> to vector<8x8xf32>
    %55 = tpu.transpose %54, [1, 0] : vector<8x8xf32> -> vector<8x8xf32>
    %cst_25 = arith.constant dense<0.000000e+00> : vector<8x8xf32>
    %56 = tpu.matmul %53, %55, %cst_25 {dimension_numbers = #tpu.dot_dimension_numbers<[1], [0], [0], [1], [0, 0, 1, 1], [], []>} : vector<8x8xf32>, vector<8x8xf32>, vector<8x8xf32> -> vector<8x8xf32>
    %cst_26 = arith.constant 0.353553385 : f32
    %57 = vector.broadcast %cst_26 : f32 to vector<8x8xf32>
    %58 = arith.mulf %56, %57 : vector<8x8xf32>
    %cst_27 = arith.constant dense<0xFF800000> : vector<8xf32>
    %59 = vector.multi_reduction <maximumf>, %58, %cst_27 [1] : vector<8x8xf32> to vector<8xf32>
    %60 = vector.shape_cast %59 : vector<8xf32> to vector<8x1xf32>
    %61 = vector.broadcast %60 : vector<8x1xf32> to vector<8x8xf32>
    %62 = arith.subf %58, %61 : vector<8x8xf32>
    %63 = math.exp %62 : vector<8x8xf32>
    %cst_28 = arith.constant dense<0.000000e+00> : vector<8xf32>
    %64 = vector.multi_reduction <add>, %63, %cst_28 [1] : vector<8x8xf32> to vector<8xf32>
    %65 = vector.shape_cast %64 : vector<8xf32> to vector<8x1xf32>
    %66 = tpu.reciprocal %65 : vector<8x1xf32> -> vector<8x1xf32>
    %67 = vector.broadcast %66 : vector<8x1xf32> to vector<8x8xf32>
    %68 = arith.mulf %63, %67 : vector<8x8xf32>
    %c0_29 = arith.constant 0 : index
    %c0_30 = arith.constant 0 : index
    %c16 = arith.constant 16 : index
    %69 = vector.load %arg13[%c0_29, %c0_30, %c16] : memref<1x8x32xf32, #tpu.memory_space<vmem>>, vector<1x8x8xf32>
    %70 = vector.shape_cast %69 : vector<1x8x8xf32> to vector<8x8xf32>
    %71 = vector.shape_cast %68 : vector<8x8xf32> to vector<1x8x8xf32>
    tpu.vector_store %arg13[%c0_29, %c0_30, %c16], %71 {strides = array<i32>} : memref<1x8x32xf32, #tpu.memory_space<vmem>>, vector<1x8x8xf32>,
    %72 = arith.addf %52, %68 : vector<8x8xf32>
    %73 = vector.extract_strided_slice %9 {offsets = [0, 24], sizes = [8, 8], strides = [1, 1]} : vector<8x32xf32> to vector<8x8xf32>
    %74 = vector.extract_strided_slice %10 {offsets = [0, 24], sizes = [8, 8], strides = [1, 1]} : vector<8x32xf32> to vector<8x8xf32>
    %75 = tpu.transpose %74, [1, 0] : vector<8x8xf32> -> vector<8x8xf32>
    %cst_31 = arith.constant dense<0.000000e+00> : vector<8x8xf32>
    %76 = tpu.matmul %73, %75, %cst_31 {dimension_numbers = #tpu.dot_dimension_numbers<[1], [0], [0], [1], [0, 0, 1, 1], [], []>} : vector<8x8xf32>, vector<8x8xf32>, vector<8x8xf32> -> vector<8x8xf32>
    %cst_32 = arith.constant 0.353553385 : f32
    %77 = vector.broadcast %cst_32 : f32 to vector<8x8xf32>
    %78 = arith.mulf %76, %77 : vector<8x8xf32>
    %cst_33 = arith.constant dense<0xFF800000> : vector<8xf32>
    %79 = vector.multi_reduction <maximumf>, %78, %cst_33 [1] : vector<8x8xf32> to vector<8xf32>
    %80 = vector.shape_cast %79 : vector<8xf32> to vector<8x1xf32>
    %81 = vector.broadcast %80 : vector<8x1xf32> to vector<8x8xf32>
    %82 = arith.subf %78, %81 : vector<8x8xf32>
    %83 = math.exp %82 : vector<8x8xf32>
    %cst_34 = arith.constant dense<0.000000e+00> : vector<8xf32>
    %84 = vector.multi_reduction <add>, %83, %cst_34 [1] : vector<8x8xf32> to vector<8xf32>
    %85 = vector.shape_cast %84 : vector<8xf32> to vector<8x1xf32>
    %86 = tpu.reciprocal %85 : vector<8x1xf32> -> vector<8x1xf32>
    %87 = vector.broadcast %86 : vector<8x1xf32> to vector<8x8xf32>
    %88 = arith.mulf %83, %87 : vector<8x8xf32>
    %c0_35 = arith.constant 0 : index
    %c0_36 = arith.constant 0 : index
    %c24 = arith.constant 24 : index
    %89 = vector.load %arg13[%c0_35, %c0_36, %c24] : memref<1x8x32xf32, #tpu.memory_space<vmem>>, vector<1x8x8xf32>
    %90 = vector.shape_cast %89 : vector<1x8x8xf32> to vector<8x8xf32>
    %91 = vector.shape_cast %88 : vector<8x8xf32> to vector<1x8x8xf32>
    tpu.vector_store %arg13[%c0_35, %c0_36, %c24], %91 {strides = array<i32>} : memref<1x8x32xf32, #tpu.memory_space<vmem>>, vector<1x8x8xf32>,
    %92 = arith.addf %72, %88 : vector<8x8xf32>
    %cst_37 = arith.constant dense<0.000000e+00> : vector<8x8xf32>
    %93 = tpu.matmul %92, %11, %cst_37 {dimension_numbers = #tpu.dot_dimension_numbers<[1], [0], [0], [1], [0, 0, 1, 1], [], []>} : vector<8x8xf32>, vector<8x8xf32>, vector<8x8xf32> -> vector<8x8xf32>
    %c0_38 = arith.constant 0 : index
    %c0_39 = arith.constant 0 : index
    %94 = vector.load %arg11[%c0_38, %c0_39] : memref<8x32xf32, #tpu.memory_space<vmem>>, vector<8x32xf32>
    %cst_40 = arith.constant dense<0.000000e+00> : vector<8x32xf32>
    %95 = tpu.matmul %93, %94, %cst_40 {dimension_numbers = #tpu.dot_dimension_numbers<[1], [0], [0], [1], [0, 0, 1, 1], [], []>} : vector<8x8xf32>, vector<8x32xf32>, vector<8x32xf32> -> vector<8x32xf32>
    %c0_41 = arith.constant 0 : index
    %c0_42 = arith.constant 0 : index
    %c0_43 = arith.constant 0 : index
    %96 = vector.load %arg12[%c0_41, %c0_42, %c0_43] : memref<1x8x32xf32, #tpu.memory_space<vmem>>, vector<1x8x32xf32>
    %97 = vector.shape_cast %96 : vector<1x8x32xf32> to vector<8x32xf32>
    %98 = vector.shape_cast %95 : vector<8x32xf32> to vector<1x8x32xf32>
    tpu.vector_store %arg12[%c0_41, %c0_42, %c0_43], %98 {strides = array<i32>} : memref<1x8x32xf32, #tpu.memory_space<vmem>>, vector<1x8x32xf32>,
    return
  }
  func.func @transform_0(%arg0: i32, %arg1: i32) -> (i32, i32, i32) {
    %c0_i32 = arith.constant 0 : i32
    %c0_i32_0 = arith.constant 0 : i32
    return %arg0, %arg1, %c0_i32 : i32, i32, i32
  }
  func.func @transform_1(%arg0: i32, %arg1: i32) -> (i32, i32, i32) {
    %c0_i32 = arith.constant 0 : i32
    %c0_i32_0 = arith.constant 0 : i32
    %c0_i32_1 = arith.constant 0 : i32
    return %arg0, %c0_i32, %c0_i32_0 : i32, i32, i32
  }
  func.func @transform_2(%arg0: i32, %arg1: i32) -> (i32, i32, i32) {
    %c0_i32 = arith.constant 0 : i32
    %c0_i32_0 = arith.constant 0 : i32
    %c0_i32_1 = arith.constant 0 : i32
    return %arg0, %c0_i32, %c0_i32_0 : i32, i32, i32
  }
  func.func @transform_3(%arg0: i32, %arg1: i32) -> (i32, i32) {
    %c0_i32 = arith.constant 0 : i32
    %c0_i32_0 = arith.constant 0 : i32
    %c0_i32_1 = arith.constant 0 : i32
    return %c0_i32, %c0_i32_0 : i32, i32
  }
  func.func @transform_4(%arg0: i32, %arg1: i32) -> (i32, i32) {
    %c0_i32 = arith.constant 0 : i32
    %c0_i32_0 = arith.constant 0 : i32
    %c0_i32_1 = arith.constant 0 : i32
    return %c0_i32, %c0_i32_0 : i32, i32
  }
  func.func @transform_5(%arg0: i32, %arg1: i32) -> (i32, i32) {
    %c0_i32 = arith.constant 0 : i32
    %c0_i32_0 = arith.constant 0 : i32
    %c0_i32_1 = arith.constant 0 : i32
    return %c0_i32, %c0_i32_0 : i32, i32
  }
  func.func @transform_6(%arg0: i32, %arg1: i32) -> (i32, i32) {
    %c0_i32 = arith.constant 0 : i32
    %c0_i32_0 = arith.constant 0 : i32
    %c0_i32_1 = arith.constant 0 : i32
    return %c0_i32, %c0_i32_0 : i32, i32
  }
  func.func @transform_7(%arg0: i32, %arg1: i32) -> (i32, i32) {
    %c0_i32 = arith.constant 0 : i32
    %c0_i32_0 = arith.constant 0 : i32
    %c0_i32_1 = arith.constant 0 : i32
    return %c0_i32, %c0_i32_0 : i32, i32
  }
  func.func @transform_8(%arg0: i32, %arg1: i32) -> (i32, i32) {
    %c0_i32 = arith.constant 0 : i32
    %c0_i32_0 = arith.constant 0 : i32
    %c0_i32_1 = arith.constant 0 : i32
    return %c0_i32, %c0_i32_0 : i32, i32
  }
  func.func @transform_9(%arg0: i32, %arg1: i32) -> (i32, i32) {
    %c0_i32 = arith.constant 0 : i32
    %c0_i32_0 = arith.constant 0 : i32
    %c0_i32_1 = arith.constant 0 : i32
    return %c0_i32, %c0_i32_0 : i32, i32
  }
  func.func @transform_10(%arg0: i32, %arg1: i32) -> (i32, i32, i32) {
    %c0_i32 = arith.constant 0 : i32
    %c0_i32_0 = arith.constant 0 : i32
    return %arg0, %arg1, %c0_i32 : i32, i32, i32
  }
  func.func @transform_11(%arg0: i32, %arg1: i32) -> (i32, i32, i32) {
    %c0_i32 = arith.constant 0 : i32
    %c0_i32_0 = arith.constant 0 : i32
    return %arg0, %arg1, %c0_i32 : i32, i32, i32
  }
}

</mosaic_0001>

<bundles_post_ra>
// kernel: tpu_custom_call.1
= control target key start
LH: loop header
LB: loop body
LE: loop exit
PB: predicated region body
PF: predicated region fallthrough
CT: control target
= control target key end

     0   :  { %s2421_s0 = inlined_call_operand.vmem [shape: f32[2,8,32], index: 0, kind: input, shape index: {}]   ;;  %s2422_s1 = inlined_call_operand.hbm [shape: f32[2,8,32], index: 1, kind: input, shape index: {}]   ;;  %s2423_s2 = inlined_call_operand.hbm [shape: f32[2,8,32], index: 2, kind: input, shape index: {}]   ;;  %s2424_s3 = inlined_call_operand.vmem [shape: f32[32,32], index: 3, kind: input, shape index: {}]   ;;  %s2425_s4 = inlined_call_operand.vmem [shape: f32[1,32], index: 4, kind: input, shape index: {}]   ;;  %s2426_s5 = inlined_call_operand.hbm [shape: f32[32,32], index: 5, kind: input, shape index: {}]   ;;  %s2427_s6 = inlined_call_operand.vmem [shape: f32[1,32], index: 6, kind: input, shape index: {}]   ;;  %s2428_s7 = inlined_call_operand.vmem [shape: f32[32,8], index: 7, kind: input, shape index: {}]   ;;  %s2429_s8 = inlined_call_operand.vmem [shape: f32[1,8], index: 8, kind: input, shape index: {}]   ;;  %s2430_s9 = inlined_call_operand.vmem [shape: f32[8,32], index: 9, kind: input, shape index: {}]   ;;  %s2431_s10 = inlined_call_operand.hbm [shape: f32[2,8,32], index: 10, kind: output, shape index: {0}]   ;;  %s2432_s11 = inlined_call_operand.hbm [shape: f32[2,8,32], index: 11, kind: output, shape index: {1}]  }
   0x1   :  { %2446 = sst [smem:[#allocation25_spill]] %s2426_s5 }
   0x2   :  { %2447 = sst [smem:[#allocation26_spill]] %s2431_s10 }
   0x3   :  { %2448 = sst [smem:[#allocation27_spill]] %s2432_s11 }
   0x4   :  { %17 = vsyncpa [#allocation5], 0 }
   0x5   :  { %19 = vsyncpa [#allocation5 + $0x1], 0 }
   0x6   :  { %20 = vsyncpa [#allocation8], 0 }
   0x7   :  { %22 = vsyncpa [#allocation8 + $0x1], 0 }
   0x8   :  { %23 = vsyncpa [#allocation6], 0 }
   0x9   :  { %25 = vsyncpa [#allocation6 + $0x1], 0 }
   0xa   :  { %26 = vsyncpa [#allocation12], 0 }
   0xb   :  { %28 = vsyncpa [#allocation12 + $0x1], 0  ;;  %s2041_s17 = smov 0   ;;  %s2043_s18 = smov 0  }
   0xc   :  { %s2045_s19 = smov 0   ;;  %s2047_s20 = smov 0  }
   0xd   :  { %s2049_s21 = smov 0   ;;  %s2051_s22 = smov 0  }
   0xe LB: > { %2449 = sst [smem:[#allocation18_spill]] %s1943_s17  ;;  %s2072_s23 = sadd.s32 4294967295, %s1963_s22   ;;  %s1963_s22 = sphi %s2051_s22, %s34_s22   ;;  %s1959_s21 = sphi %s2049_s21, %s2481_s21   ;;  %s1955_s20 = sphi %s2047_s20, %s2480_s20   ;;  %s1951_s19 = sphi %s2045_s19, %s2479_s19   ;;  %s1947_s18 = sphi %s2043_s18, %s2483_s18   ;;  %s1943_s17 = sphi %s2041_s17, %s2482_s17  }
   0xf   : > { %2450 = sst [smem:[#allocation19_spill]] %s1951_s19  ;;  %s1498_s24 = sadd.s32 4294967294, %s1963_s22  }
  0x10   : > { %2451 = sst [smem:[#allocation20_spill]] %s1959_s21  ;;  %p94_p0 = scmp.ne.s32.totalorder %s1947_s18, %s1943_s17 }
  0x11   : > { %p2435_p1 = scmp.eq.s32.totalorder %s2072_s23, 0  ;;  %p299_p3 = scmp.eq.s32.totalorder %s1498_s24, 1 }
  0x12   : > { %p1499_p5 = scmp.ge.s32.totalorder %s1963_s22, 1  ;;  %p334_p7 = scmp.lt.s32.totalorder %s1963_s22, 3 }
  0x13   : > { %p2081_p4 = por %p2435_p1, %p94_p0  ;;  %p2086_p6 = por %p299_p3, %p94_p0 }
  0x14   : > { %p2091_p8 = pnand %p1499_p5, %p334_p7  ;;  %s1965_s28 = smov [#allocation9]  }
  0x15   : > { %s2452_s25 = scalar_select %p2081_p4, 1, 0 }
  0x16   : > { %s2453_s26 = scalar_select %p2086_p6, 1, 0 }
  0x17   : > { %s2455_s27 = scalar_select %p2091_p8, 1, 0 }
  0x18   : > { %2454 = sst [smem:[#allocation21_spill]] %s2453_s26  ;;  %s352_s29 = sshll.u32 %s1965_s28, 4  ;;  %s353_s29 = int_to_ptr.vmem [resolvable:$true] %s352_s29 }
  0x19   : > { %p1655_p9 = pneg %p2091_p8  ;;  %s46_s12 = sadd.s32 1, %s1959_s21 }
  0x1a   : > { %s2457_s5 = sld [smem:[#allocation25_spill]] }
  0x1b   : > { %p2100_p11 = pnand %p1655_p9, %p2435_p1 }
  0x1d   : > { %p1755_p13 = pneg %p2100_p11 }
  0x20   : > { %s1753_s15 = scalar_lea.hbm %s2457_s5, 512 }
  0x21   : > { %p1754_p12 = scmp.ne.s32.totalorder %s2457_s5, %s1753_s15  ;;  %p1760_p5 = scmp.lt.u32.totalorder %s1753_s15, %s2457_s5 }
  0x23   : > { %p1756_p0 = pnand %p1755_p13, %p1754_p12 }
  0x25   : > { %p1757_p3 = pneg %p1756_p0 }
  0x27   : > { %p1762_p7 = pnand %p1760_p5, %p1757_p3 }
  0x29   : > { %1765 = shalt.err (!%p1762_p7)
}
  0x2a   : > { %s1766_s17 = scalar_lea.vmem %s353_s29, 512  ;;  %p1774_p2 = scmp.lt.s32.totalorder %s353_s29, %s353_s29 }
  0x2b   : > { %p1767_p9 = scmp.ne.s32.totalorder %s353_s29, %s1766_s17  ;;  %p1775_p6 = scmp.lt.s32.totalorder %s1766_s17, %s1766_s17 }
  0x2d   : > { %p1769_p10 = pnand %p1767_p9, %p1755_p13  ;;  %p1776_p4 = por %p1775_p6, %p1774_p2 }
  0x2f   : > { %p1770_p1 = pneg %p1769_p10 }
  0x31   : > { %p1777_p8 = pnand %p1776_p4, %p1770_p1 }
  0x33   : > { %1780 = shalt.err (!%p1777_p8)
}
  0x34   : > { %s1966_s13 = smov 128   ;;  %s1967_s26 = smov 8  }
  0x35   : > { %1658 = dma.hbm_to_vmem [thread:$0]  (!%p2100_p11), %s2457_s5, 512, %s353_s29, [#allocation8], %s1966_s13, %s1966_s13, %s1967_s26  }
  0x36   : > { %p48_p1 = scmp.ge.s32.totalorder %s46_s12, 2  ;;  %s81_s17 = sadd.s32 1, %s1951_s19 }
  0x37   : > { %p88_p2 = scmp.ne.s32.totalorder %s1951_s19, %s1947_s18  ;;  %p89_p4 = scmp.eq.s32.totalorder %s1963_s22, 0 }
  0x38   : > { %s2485_s12 = smov (%p48_p1, %s46_s12), 0  ;;  %p2460_p8 = scmp.eq.s32.totalorder %s2072_s23, 1 }
  0x39   : > { %2458 = sst [smem:[#allocation22_spill]] %s2485_s12  ;;  %p2127_p6 = por %p89_p4, %p88_p2 }
  0x3a   : > { %p2133_p10 = por %p2460_p8, %p88_p2  ;;  %s78_s24 = ssub.s32 %s1959_s21, %s2485_s12 }
  0x3b   : > { %p1674_p11 = scmp.lt.s32.totalorder %s1963_s22, 2  ;;  %p79_p12 = scmp.eq.s32.totalorder %s78_s24, 0 }
  0x3c   : > { %s2461_s30 = scalar_select %p2133_p10, 1, 0 }
  0x3d   : > { %s388_s29 = sand.u32 1, %s1951_s19   ;;  %s1503_s26 = sshll.u32 %s1959_s21, 7 }
  0x3e   : > { %2462 = sst [smem:[#allocation23_spill]] %s2461_s30  ;;  %s2141_s28 = sshll.u32 %s388_s29, 3 }
  0x3f   : > { %s2144_s13 = scalar_select %p79_p12, %s1951_s19, %s81_s17  }
  0x40   : > { %s2150_s5 = scalar_lea.hbm %s2422_s1, %s1503_s26  ;;  %s392_s10 = scalar_lea.vmem [#allocation4], %s2141_s28 }
  0x41   : > { %2463 = sst [smem:[#allocation24_spill]] %s2144_s13  ;;  %s399_s12 = sshll.u32 %s392_s10, 4  ;;  %s2153_s12 = int_to_ptr.vmem [resolvable:$true] %s399_s12 }
  0x42   : > { %p2157_p13 = pnand %p1674_p11, %p2127_p6  ;;  %s2164_s14 = scalar_lea.hbm %s2423_s2, %s1503_s26 }
  0x43   : > { %s406_s15 = sand.u32 1, %s1963_s22   ;;  %s389_s13 = scalar_lea.sflag [#allocation5], %s388_s29 }
  0x44   : > { %s1781_s19 = scalar_lea.hbm %s2150_s5, 128  ;;  %p1783_p3 = pneg %p2157_p13 }
  0x45   : > { %p1782_p0 = scmp.ne.s32.totalorder %s2150_s5, %s1781_s19  ;;  %s1786_s11 = scalar_lea.hbm %s2422_s1, 256 }
  0x46   : > { %p1787_p9 = scmp.lt.u32.totalorder %s2150_s5, %s2422_s1  ;;  %p1788_p1 = scmp.lt.u32.totalorder %s1786_s11, %s1781_s19 }
  0x47   : > { %p1784_p5 = pnand %p1783_p3, %p1782_p0  ;;  %p1790_p4 = scmp.lt.u32.totalorder %s1781_s19, %s2150_s5 }
  0x48   : > { %p1789_p2 = por %p1788_p1, %p1787_p9 }
  0x49   : > { %p1785_p7 = pneg %p1784_p5 }
  0x4a   : > { %p1791_p6 = por %p1790_p4, %p1789_p2 }
  0x4c   : > { %p1792_p8 = pnand %p1791_p6, %p1785_p7 }
  0x4e   : > { %1795 = shalt.err (!%p1792_p8)
}
  0x4f   : > { %s1796_s29 = scalar_lea.vmem %s2153_s12, 128  ;;  %s1968_s26 = smov [#allocation4]  }
  0x50   : > { %p1797_p11 = scmp.ne.s32.totalorder %s2153_s12, %s1796_s29  ;;  %s1801_s17 = sshll.u32 %s1968_s26, 4  ;;  %s1802_s17 = int_to_ptr.vmem [resolvable:$false] %s1801_s17 }
  0x51   : > { %s1803_s30 = scalar_lea.vmem %s1802_s17, 256  ;;  %p1804_p5 = scmp.lt.s32.totalorder %s2153_s12, %s1802_s17 }
  0x52   : > { %p1799_p12 = pnand %p1797_p11, %p1783_p3  ;;  %p1805_p9 = scmp.lt.s32.totalorder %s1803_s30, %s1796_s29 }
  0x54   : > { %p1800_p0 = pneg %p1799_p12  ;;  %p1806_p1 = por %p1805_p9, %p1804_p5 }
  0x56   : > { %p1807_p2 = pnand %p1806_p1, %p1800_p0 }
  0x58   : > { %1810 = shalt.err (!%p1807_p2)
}
  0x59   : > { %1662 = dma.hbm_to_vmem [thread:$0]  (!%p2157_p13), %s2150_s5, 128, %s2153_s12, %s389_s13  }
  0x5a   : > { %s410_s11 = scalar_lea.vmem [#allocation7], %s2141_s28  ;;  %s407_s10 = scalar_lea.sflag [#allocation8], %s406_s15 }
  0x5b   : > { %s417_s19 = sshll.u32 %s410_s11, 4  ;;  %s1811_s16 = scalar_lea.hbm %s2164_s14, 128  ;;  %s418_s19 = int_to_ptr.vmem [resolvable:$true] %s417_s19 }
  0x5c   : > { %p1812_p7 = scmp.ne.s32.totalorder %s2164_s14, %s1811_s16  ;;  %s1816_s26 = scalar_lea.hbm %s2423_s2, 256 }
  0x5d   : > { %p1817_p8 = scmp.lt.u32.totalorder %s2164_s14, %s2423_s2  ;;  %p1818_p11 = scmp.lt.u32.totalorder %s1816_s26, %s1811_s16 }
  0x5e   : > { %p1814_p4 = pnand %p1812_p7, %p1783_p3  ;;  %p1820_p0 = scmp.lt.u32.totalorder %s1811_s16, %s2164_s14 }
  0x5f   : > { %p1819_p12 = por %p1818_p11, %p1817_p8 }
  0x60   : > { %p1815_p6 = pneg %p1814_p4 }
  0x61   : > { %p1821_p5 = por %p1820_p0, %p1819_p12 }
  0x63   : > { %p1822_p9 = pnand %p1821_p5, %p1815_p6 }
  0x65   : > { %1825 = shalt.err (!%p1822_p9)
}
  0x66   : > { %s1826_s5 = scalar_lea.vmem %s418_s19, 128  ;;  %s1969_s12 = smov [#allocation7]  }
  0x67   : > { %p1827_p1 = scmp.ne.s32.totalorder %s418_s19, %s1826_s5  ;;  %s1831_s28 = sshll.u32 %s1969_s12, 4  ;;  %s1832_s28 = int_to_ptr.vmem [resolvable:$false] %s1831_s28 }
  0x68   : > { %s1833_s13 = scalar_lea.vmem %s1832_s28, 256  ;;  %p1834_p4 = scmp.lt.s32.totalorder %s418_s19, %s1832_s28 }
  0x69   : > { %p1829_p2 = pnand %p1827_p1, %p1783_p3  ;;  %p1835_p10 = scmp.lt.s32.totalorder %s1833_s13, %s1826_s5 }
  0x6b   : > { %p1830_p7 = pneg %p1829_p2  ;;  %p1836_p8 = por %p1835_p10, %p1834_p4 }
  0x6d   : > { %p1837_p11 = pnand %p1836_p8, %p1830_p7 }
  0x6f   : > { %1840 = shalt.err (!%p1837_p11)
}
  0x70   : > { %1665 = dma.hbm_to_vmem [thread:$0]  (!%p2157_p13), %s2164_s14, 128, %s418_s19, %s407_s10  }
  0x71   : > { %p2465_p6 = scmp.ne.s32.totalorder %s2455_s27, 0 }
  0x72   : > { %s2217_s15 = sand.u32 (!%p2465_p6), 1, %s1947_s18   ;;  %p2466_p10 = scmp.ne.s32.totalorder (!%p2465_p6), %s2452_s25, 0 }
  0x73   : > { %426 = sbr.rel (%p2465_p6) target bundleno = 1456 (0x5b0), region = 60  ;;  %s2220_s11 = sshll.u32 (!%p2465_p6), %s2217_s15, 3 }
  0x74   : > { %s429_s16 = scalar_lea.sflag (!%p2465_p6), [#allocation5], %s2217_s15  ;;  %s432_s21 = scalar_lea.vmem (!%p2465_p6), [#allocation4], %s2220_s11 }
  0x7a   : > { %1922 = dma.done.wait (%p2466_p10), %s429_s16, 128  }
  0x7b   : > { %1924 = vsyncadd (%p2466_p10), %s429_s16, 4294967168  ;;  %s437_s27 = sand.u32 1, %s2072_s23   ;;  %s441_s14 = scalar_lea.vmem [#allocation7], %s2220_s11 }
  0x7c   : > { %s438_s24 = scalar_lea.sflag [#allocation8], %s437_s27 }
  0x7d   : > { %1926 = dma.done.wait (%p2466_p10), %s438_s24, 128  }
  0x7e   : > { %1928 = vsyncadd (%p2466_p10), %s438_s24, 4294967168  ;;  %p2467_p13 = scmp.eq.s32.totalorder %s2072_s23, 0 }
  0x80   : > { %1930 = dma.done.wait (%p2467_p13), [#allocation8], 512   ;;  %p2468_p3 = pmov %p2467_p13 }
  0x81   : > { %v1970_v0 = vmov 0.0|0.0   ;;  %vm1971_vm0 = vmmov 0   ;;  %v1972_v1 = vmov 0.0   ;;  %v514_v2 = vld [vmem:[#allocation9] sm:$0xff]  ;;  %v515_v3 = vld [vmem:[#allocation9 + $0x8] sm:$0xff]  ;;  %v516_v4 = vld [vmem:[#allocation9 + $0x10] sm:$0xff] }
  0x82   : > { %1932 = vsyncadd (%p2468_p3), [#allocation8], 4294966784  ;;  %1625 = vmatprep.subr.bf16.mxu0 %v1970_v0  ;;  %1570 = vmatprep.mubr.msk.f32.mxu0 %vm1971_vm0, %v1972_v1  ;;  %v1626_v5 = vpack.c.bf16 %v515_v3, %v514_v2  ;;  %v517_v6 = vld [vmem:[#allocation9 + $0x18] sm:$0xff]  ;;  %p501_p12 = scmp.lt.s32.totalorder %s1955_s20, 1  ;;  %v599_v8 = vld [vmem:[%s2428_s7] sm:$0xff]  ;;  %vm525_vm1 = vcmask 261120  }
  0x83   : > { %1631 = vmatprep.subr.bf16.mxu1 %v1970_v0  ;;  %1581 = vmatprep.mubr.msk.f32.mxu1 %vm1971_vm0, %v1972_v1  ;;  %v1629_v7 = vpack.c.bf16 %v517_v6, %v516_v4  ;;  %v600_v9 = vld [vmem:[%s2428_s7 + $0x8] sm:$0xff]  ;;  %v687_v10 = vld [vmem:[%s2424_s3] sm:$0xff]  ;;  %v512_v13 = vld [vmem:[%s432_s21] sm:$0xff]  ;;  %vm684_vm2 = vcmask 64512   ;;  %s1974_s12 = smov 112   ;;  %s1975_s28 = smov 104  }
  0x84   : > { %1627 = vmatpush3.bf16.msra.mxu0 %v1626_v5  ;;  %v688_v11 = vld [vmem:[%s2424_s3 + $0x8] sm:$0xff]  ;;  %v1632_v12 = vpack.c.bf16 %v600_v9, %v599_v8  ;;  %s502_s5 = scalar_select %p501_p12, %s1955_s20, 1  ;;  %v689_v15 = vld [vmem:[%s2424_s3 + $0x10] sm:$0xff]  ;;  %v690_v16 = vld [vmem:[%s2424_s3 + $0x18] sm:$0xff]  ;;  %vm959_vm3 = vcmask 130112   ;;  %vm1056_vm4 = vcmask 195712  }
  0x85   : > { %1628 = vmatprep.subr.bf16.mxu0 %v1970_v0  ;;  %v1638_v14 = vpack.c.bf16 %v688_v11, %v687_v10  ;;  %v1641_v17 = vpack.c.bf16 %v690_v16, %v689_v15  ;;  %v601_v19 = vld [vmem:[%s2428_s7 + $0x10] sm:$0xff]  ;;  %v602_v20 = vld [vmem:[%s2428_s7 + $0x18] sm:$0xff]  ;;  %v513_v22 = vld [vmem:[%s441_s14] sm:$0xff]  ;;  %s1973_s14 = smov 120   ;;  %s1977_s25 = smov 16   ;;  %vm1153_vm5 = vcmask 261312  }
  0x86   : > { %1633 = vmatpush3.bf16.msra.mxu1 %v1632_v12  ;;  %s1512_s27 = sshll.u32 %s502_s5, 3  ;;  %v1635_v21 = vpack.c.bf16 %v602_v20, %v601_v19  ;;  %v1513_v23 = vld [vmem:[%s2427_s6] ss:$0 sm:$0xff]  ;;  %s1978_s19 = smov 24  }
  0x87   : > { %1634 = vmatprep.subr.bf16.mxu1 %v1970_v0  ;;  %s507_s23 = scalar_lea.vmem %s2421_s0, %s1512_s27  ;;  %v1517_v27 = vld [vmem:[%s2425_s4] ss:$0 sm:$0xff]  ;;  %s2326_s27 = scalar_lea.vmem [#allocation11], %s2220_s11 }
  0x88   : > { %1630 = vmatpush3.bf16.msra.mxu0 %v1629_v7  ;;  %v686_v18 = vld [vmem:[%s507_s23] sm:$0xff]  ;;  %s1976_s23 = smov 8   ;;  %s2469_s10 = sld [smem:[#allocation23_spill]] }
  0x89   : > { %1637 = vmatprep.subr.bf16.mxu0 %v1970_v0  ;;  %v1515_v32 = vld [vmem:[%s2429_s8] ss:$0 sm:$0xff]  ;;  %s1531_s29 = sshll.u32 %s1955_s20, 7  ;;  %s2470_s30 = sld [smem:[#allocation27_spill]] }
  0x8a   : > { %1636 = vmatpush3.bf16.msra.mxu1 %v1635_v21  ;;  %v1229_v21 = vld [vmem:[%s2430_s9] sm:$0xff]  ;;  %s1979_s13 = smov [#allocation11]  }
  0x8b   : > { %1571 = vmatmul.mubr.msk.f32.vlgmr.msra.gmra.mrb[0].mxu0 %vm525_vm1, %v512_v13  ;;  %1595 = vmatprep.subr.mxu1 %v1972_v1  ;;  %s1845_s16 = sshll.u32 %s1979_s13, 4  ;;  %s1846_s16 = int_to_ptr.vmem [resolvable:$false] %s1845_s16 }
  0x8c   : > { %1639 = vmatpush3.bf16.msra.mxu0 %v1638_v14  ;;  %1592 = vmatprep.mubr.msk.f32.mxu0 %vm1971_vm0, %v1972_v1  ;;  %s1847_s21 = scalar_lea.vmem %s1846_s16, 256 }
  0x8d   : > { %1640 = vmatprep.subr.bf16.mxu0 %v1970_v0  ;;  %1582 = vmatmul.mubr.msk.f32.vlgmr.msra.gmra.mrb[0].mxu1 %vm525_vm1, %v513_v22 }
  0x8e   : > { %1597 = vmatprep.mubr.msk.f32.mxu1 %vm1971_vm0, %v1972_v1  ;;  %p2471_p5 = scmp.ne.s32.totalorder %s2469_s10, 0 }
  0x8f   : > { %s2344_s5 = scalar_lea.hbm %s2470_s30, %s1531_s29 }
  0x90   : > { %1642 = vmatpush3.bf16.msra.mxu0 %v1641_v17 }
  0x91   : > { %1605 = vmatprep.subr.mxu0 %v1972_v1 }
  0x93   : > { %1593 = vmatmul.mubr.msk.f32.vlgmr.msra.gmra.mrb[2].mxu0 %vm525_vm1, %v686_v18 }
  0x94   : > { %1607 = vmatprep.mubr.msk.f32.mxu0 %vm1971_vm0, %v1972_v1 }
 0x15e   : > { %v595_v24 = vpop.f32.mrb[0].mxu0 }
 0x15f   : > { %v596_v25 = vadd.f32 %v1513_v23, %v595_v24  ;;  %v1572_v26 = vpop.f32.mrb[1].mxu0 }
 0x160   : > { %v679_v33 = vpop.f32.mrb[0].mxu1 }
 0x161   : > { %683 = vst.msk [vmem:[#allocation2] sm:$0xff] %vm525_vm1, %v596_v25  ;;  %v680_v34 = vadd.f32 %v1515_v32, %v679_v33  ;;  %v1583_v35 = vpop.f32.mrb[1].mxu1 }
 0x163   : > { %685 = vst.msk [vmem:[#allocation3] sm:$0xff] %vm684_vm2, %v680_v34 }
 0x166   : > { %v768_v28 = vpop.f32.mrb[2].mxu0 }
 0x167   : > { %v769_v29 = vadd.f32 %v1517_v27, %v768_v28  ;;  %v1594_v30 = vpop.f32.mrb[3].mxu0 }
 0x168   : > { %v772_v31 = vld [vmem:[#allocation2] sm:$0xff] }
 0x169   : > { %867 = vrot.lane.b32.xlu0 %v772_v31, %s1973_s14  ;;  %1596 = vmatpush3.xpose.msk.msra.mxu1 %vm684_vm2, %v772_v31 }
 0x16a   : > { %865 = vrot.lane.b32.xlu1 %v769_v29, %s1973_s14  ;;  %1600 = vmatprep.subr.mxu1 %v1972_v1  ;;  %v773_v42 = vld [vmem:[#allocation3] sm:$0xff]  ;;  %s1338_s14 = sshll.u32 %s2326_s27, 4  ;;  %s1339_s14 = int_to_ptr.vmem [resolvable:$true] %s1338_s14 }
 0x16b   : > { %p1848_p2 = scmp.lt.s32.totalorder %s1339_s14, %s1846_s16 }
 0x16c   : > { %1598 = vmatmul.mubr.msk.f32.vlgmr.msra.gmra.mrb[2].mxu1 %vm684_vm2, %v769_v29 }
 0x16d   : > { %964 = vrot.lane.b32.xlu0 %v772_v31, %s1974_s12  ;;  %1602 = vmatprep.mubr.msk.f32.mxu1 %vm1971_vm0, %v1972_v1 }
 0x16e   : > { %1061 = vrot.lane.b32.xlu1 %v772_v31, %s1975_s28 }
 0x171   : > { %962 = vrot.lane.b32.xlu0 %v769_v29, %s1974_s12  ;;  %s1310_s12 = scalar_lea.sflag [#allocation12], %s2217_s15 }
 0x172   : > { %1059 = vrot.lane.b32.xlu1 %v769_v29, %s1975_s28  ;;  %s1841_s28 = scalar_lea.vmem %s1339_s14, 128 }
 0x173   : > { %p1842_p0 = scmp.ne.s32.totalorder %s1339_s14, %s1841_s28  ;;  %p1849_p7 = scmp.lt.s32.totalorder %s1847_s21, %s1841_s28 }
 0x175   : > { %p1843_p9 = pnand %p1842_p0, %p2471_p5  ;;  %p1850_p4 = por %p1849_p7, %p1848_p2 }
 0x177   : > { %p1844_p1 = pneg %p1843_p9 }
 0x179   : > { %p1851_p8 = pnand %p1850_p4, %p1844_p1 }
 0x1db   : > { %v868_v36 = vpop.permute.xlu0 %867 }
 0x1dc   : > { %v866_v37 = vpop.permute.xlu1 %865  ;;  %1601 = vmatpush3.xpose.msk.msra.mxu1 %vm684_vm2, %v868_v36 }
 0x1dd   : > { %1610 = vmatprep.subr.mxu1 %v1972_v1 }
 0x1df   : > { %v965_v38 = vpop.permute.xlu0 %964  ;;  %1603 = vmatmul.mubr.msk.f32.vlgmr.msra.gmra.mrb[4].mxu1 %vm684_vm2, %v866_v37 }
 0x1e0   : > { %v1062_v39 = vpop.permute.xlu1 %1061  ;;  %1606 = vmatpush3.xpose.msk.msra.mxu0 %vm684_vm2, %v965_v38  ;;  %1612 = vmatprep.mubr.msk.f32.mxu1 %vm1971_vm0, %v1972_v1 }
 0x1e1   : > { %1611 = vmatpush3.xpose.msk.msra.mxu1 %vm684_vm2, %v1062_v39  ;;  %1615 = vmatprep.subr.mxu0 %v1972_v1 }
 0x1e2   : > { %1620 = vmatprep.subr.mxu1 %v1972_v1 }
 0x1e3   : > { %v963_v40 = vpop.permute.xlu0 %962 }
 0x1e4   : > { %v1060_v41 = vpop.permute.xlu1 %1059  ;;  %1608 = vmatmul.mubr.msk.f32.vlgmr.msra.gmra.mrb[4].mxu0 %vm684_vm2, %v963_v40 }
 0x1e5   : > { %1613 = vmatmul.mubr.msk.f32.vlgmr.msra.gmra.mrb[6].mxu1 %vm684_vm2, %v1060_v41  ;;  %1617 = vmatprep.mubr.msk.f32.mxu0 %vm1971_vm0, %v1972_v1 }
 0x1e6   : > { %1622 = vmatprep.mubr.msk.f32.mxu1 %vm1971_vm0, %v1972_v1  ;;  %1616 = vmatpush3.msra.mxu0 %v773_v42 }
 0x1e7   : > { %1621 = vmatpush3.msra.mxu1 %v1229_v21 }
 0x23f   : > { %v847_v43 = vpop.f32.mrb[2].mxu1 }
 0x240   : > { %v851_v44 = vmul.f32 0.35355338, %v847_v43  ;;  %v1599_v45 = vpop.f32.mrb[3].mxu1 }
 0x242   : > { %v852_v46 = vsel %vm684_vm2, %v851_v44, -inf }
 0x243   : > { %853 = vmax.xlane.f32.xlu0 %v852_v46 }
 0x2b2   : > { %v939_v47 = vpop.f32.mrb[4].mxu1 }
 0x2b3   : > { %v943_v48 = vmul.f32 0.35355338, %v939_v47  ;;  %v1604_v49 = vpop.f32.mrb[5].mxu1 }
 0x2b5   : > { %v944_v50 = vsel %vm684_vm2, %v943_v48, -inf }
 0x2b6   : > { %945 = vmax.xlane.f32.xlu1 %v944_v50 }
 0x2b7   : > { %v1036_v51 = vpop.f32.mrb[4].mxu0 }
 0x2b8   : > { %v1040_v52 = vmul.f32 0.35355338, %v1036_v51  ;;  %v1133_v53 = vpop.f32.mrb[6].mxu1  ;;  %v1609_v54 = vpop.f32.mrb[5].mxu0 }
 0x2b9   : > { %v1614_v55 = vpop.f32.mrb[7].mxu1  ;;  %v1137_v56 = vmul.f32 0.35355338, %v1133_v53 }
 0x2ba   : > { %v1041_v57 = vsel %vm684_vm2, %v1040_v52, -inf }
 0x2bb   : > { %1042 = vmax.xlane.f32.xlu0 %v1041_v57  ;;  %v1138_v58 = vsel %vm684_vm2, %v1137_v56, -inf }
 0x2bf   : > { %1139 = vmax.xlane.f32.xlu0 %v1138_v58 }
 0x2d0   : > { %v854_v59 = vpop.xlane.xlu0 %853 }
 0x2d1   : > { %v855_v60 = vsub.f32 %v851_v44, %v854_v59 }
 0x2d3   : > { %v856_v61 = vmul.f32 1.442695, %v855_v60 }
 0x2d5   : > { %1737 = vpow2.f32 %v856_v61 }
 0x2df   : > { %v1738_v62 = vpop.eup %1737 }
 0x2e0   : > { %v858_v63 = vsel %vm684_vm2, %v1738_v62, 0.0 }
 0x2e1   : > { %859 = vadd.xlane.f32.xlu1 %v858_v63 }
 0x343   : > { %v946_v0 = vpop.xlane.xlu1 %945 }
 0x344   : > { %v947_v1 = vsub.f32 %v943_v48, %v946_v0 }
 0x346   : > { %v948_v2 = vmul.f32 1.442695, %v947_v1 }
 0x348   : > { %1739 = vpow2.f32 %v948_v2  ;;  %v1043_v3 = vpop.xlane.xlu0 %1042 }
 0x349   : > { %v1044_v4 = vsub.f32 %v1040_v52, %v1043_v3 }
 0x34b   : > { %v1045_v5 = vmul.f32 1.442695, %v1044_v4 }
 0x34c   : > { %v1140_v6 = vpop.xlane.xlu0 %1139 }
 0x34d   : > { %1741 = vpow2.f32 %v1045_v5  ;;  %v1141_v7 = vsub.f32 %v1137_v56, %v1140_v6 }
 0x34f   : > { %v1142_v8 = vmul.f32 1.442695, %v1141_v7 }
 0x351   : > { %1743 = vpow2.f32 %v1142_v8 }
 0x352   : > { %v1740_v9 = vpop.eup %1739 }
 0x353   : > { %v950_v10 = vsel %vm684_vm2, %v1740_v9, 0.0 }
 0x354   : > { %951 = vadd.xlane.f32.xlu0 %v950_v10 }
 0x357   : > { %v1742_v11 = vpop.eup %1741 }
 0x358   : > { %v1047_v12 = vsel %vm684_vm2, %v1742_v11, 0.0 }
 0x359   : > { %1048 = vadd.xlane.f32.xlu1 %v1047_v12 }
 0x35b   : > { %v1744_v13 = vpop.eup %1743 }
 0x35c   : > { %v1144_v14 = vsel %vm684_vm2, %v1744_v13, 0.0 }
 0x35d   : > { %1145 = vadd.xlane.f32.xlu0 %v1144_v14 }
 0x36e   : > { %v860_v15 = vpop.xlane.xlu1 %859 }
 0x36f   : > { %1745 = vrcp.f32 %v860_v15 }
 0x379   : > { %v1746_v16 = vpop.eup %1745 }
 0x37a   : > { %v862_v17 = vmul.f32 %v1746_v16, %v1738_v62 }
 0x37c   : > { %863 = vst.msk [vmem:[%s2326_s27] sm:$0xff] %vm684_vm2, %v862_v17 }
 0x3e1   : > { %v952_v18 = vpop.xlane.xlu0 %951 }
 0x3e2   : > { %1747 = vrcp.f32 %v952_v18 }
 0x3e6   : > { %v1049_v19 = vpop.xlane.xlu1 %1048 }
 0x3e7   : > { %1749 = vrcp.f32 %v1049_v19 }
 0x3ea   : > { %v1146_v20 = vpop.xlane.xlu0 %1145 }
 0x3eb   : > { %1751 = vrcp.f32 %v1146_v20 }
 0x3ec   : > { %v1748_v22 = vpop.eup %1747 }
 0x3ed   : > { %v954_v23 = vmul.f32 %v1748_v22, %v1740_v9 }
 0x3ef   : > { %956 = vrot.lane.b32.xlu1 %v954_v23, %s1976_s23  ;;  %v961_v26 = vadd.f32 %v954_v23, %v862_v17 }
 0x3f1   : > { %v1750_v24 = vpop.eup %1749 }
 0x3f2   : > { %v1051_v25 = vmul.f32 %v1750_v24, %v1742_v11 }
 0x3f4   : > { %1053 = vrot.lane.b32.xlu0 %v1051_v25, %s1977_s25  ;;  %v1058_v28 = vadd.f32 %v1051_v25, %v961_v26 }
 0x3f5   : > { %v1752_v27 = vpop.eup %1751 }
 0x3f6   : > { %v1148_v29 = vmul.f32 %v1752_v27, %v1744_v13 }
 0x3f8   : > { %1150 = vrot.lane.b32.xlu1 %v1148_v29, %s1978_s19  ;;  %v1155_v30 = vadd.f32 %v1148_v29, %v1058_v28 }
 0x3fa   : > { %1618 = vmatmul.mubr.msk.f32.vlgmr.msra.gmra.mrb[6].mxu0 %vm684_vm2, %v1155_v30 }
 0x461   : > { %v957_v31 = vpop.permute.xlu1 %956 }
 0x462   : > { %960 = vst.msk [vmem:[%s2326_s27] sm:$0xff] %vm959_vm3, %v957_v31 }
 0x466   : > { %v1054_v32 = vpop.permute.xlu0 %1053 }
 0x467   : > { %1057 = vst.msk [vmem:[%s2326_s27] sm:$0xff] %vm1056_vm4, %v1054_v32 }
 0x46a   : > { %v1151_v33 = vpop.permute.xlu1 %1150 }
 0x46b   : > { %1154 = vst.msk [vmem:[%s2326_s27] sm:$0xff] %vm1153_vm5, %v1151_v33 }
 0x4cd   : > { %v1225_v34 = vpop.f32.mrb[6].mxu0 }
 0x4ce   : > { %v1619_v35 = vpop.f32.mrb[7].mxu0  ;;  %1623 = vmatmul.mubr.msk.f32.vlgmr.msra.gmra.mrb[8].mxu1 %vm684_vm2, %v1225_v34 }
 0x4cf   : > { %1854 = shalt.err (!%p1851_p8)
}
 0x4d0   : > { %s1855_s27 = scalar_lea.hbm %s2344_s5, 128  ;;  %s1859_s25 = scalar_lea.hbm %s2470_s30, 256 }
 0x4d1   : > { %p1856_p11 = scmp.ne.s32.totalorder %s2344_s5, %s1855_s27  ;;  %p1860_p13 = scmp.lt.u32.totalorder %s2344_s5, %s2470_s30 }
 0x4d2   : > { %p1861_p3 = scmp.lt.u32.totalorder %s1859_s25, %s1855_s27  ;;  %p1863_p0 = scmp.lt.u32.totalorder %s1855_s27, %s2344_s5 }
 0x4d3   : > { %p1857_p6 = pnand %p1856_p11, %p2471_p5 }
 0x4d4   : > { %p1862_p12 = por %p1861_p3, %p1860_p13 }
 0x4d5   : > { %p1858_p10 = pneg %p1857_p6 }
 0x4d6   : > { %p1864_p9 = por %p1863_p0, %p1862_p12 }
 0x4d8   : > { %p1865_p1 = pnand %p1864_p9, %p1858_p10 }
 0x4da   : > { %1868 = shalt.err (!%p1865_p1)
}
 0x4db   : > { %1652 = dma.vmem_to_hbm [thread:$0]  (%p2471_p5), %s1339_s14, 128, %s2344_s5, %s1310_s12  }
 0x4dc   : > { %s493_s17 = scalar_lea.vmem [#allocation10], %s2220_s11  ;;  %s2472_s21 = sld [smem:[#allocation26_spill]] }
 0x4dd   : > { %s1324_s28 = sshll.u32 %s493_s17, 4  ;;  %s1305_s27 = scalar_lea.sflag [#allocation6], %s2217_s15  ;;  %s2373_s28 = int_to_ptr.vmem [resolvable:$true] %s1324_s28 }
 0x4de   : > { %s1869_s25 = scalar_lea.vmem %s2373_s28, 128  ;;  %s1980_s20 = smov [#allocation10]  }
 0x4df   : > { %p1870_p2 = scmp.ne.s32.totalorder %s2373_s28, %s1869_s25  ;;  %s1873_s11 = sshll.u32 %s1980_s20, 4  ;;  %s1874_s11 = int_to_ptr.vmem [resolvable:$false] %s1873_s11 }
 0x4e0   : > { %p1876_p8 = scmp.lt.s32.totalorder %s2373_s28, %s1874_s11 }
 0x4e1   : > { %p1871_p7 = pnand %p1870_p2, %p2471_p5 }
 0x4e2   : > { %s2473_s24 = smov %s2472_s21  ;;  %s2371_s23 = scalar_lea.hbm %s2472_s21, %s1531_s29 }
 0x4e3   : > { %p1872_p4 = pneg %p1871_p7  ;;  %s1875_s29 = scalar_lea.vmem %s1874_s11, 256 }
 0x4e4   : > { %p1877_p11 = scmp.lt.s32.totalorder %s1875_s29, %s1869_s25 }
 0x4e6   : > { %p1878_p6 = por %p1877_p11, %p1876_p8 }
 0x4e8   : > { %p1879_p10 = pnand %p1878_p6, %p1872_p4 }
 0x5a1   : > { %v1299_v36 = vpop.f32.mrb[8].mxu1 }
 0x5a2   : > { %1303 = vst.msk [vmem:[%s493_s17] sm:$0xff] %vm525_vm1, %v1299_v36  ;;  %v1624_v37 = vpop.f32.mrb[9].mxu1 }
 0x5a3   : > { %1882 = shalt.err (!%p1879_p10)
}
 0x5a4   : > { %s1883_s15 = scalar_lea.hbm %s2371_s23, 128  ;;  %s1887_s12 = scalar_lea.hbm %s2473_s24, 256 }
 0x5a5   : > { %p1884_p13 = scmp.ne.s32.totalorder %s2371_s23, %s1883_s15  ;;  %p1888_p0 = scmp.lt.u32.totalorder %s2371_s23, %s2473_s24 }
 0x5a6   : > { %p1889_p9 = scmp.lt.u32.totalorder %s1887_s12, %s1883_s15  ;;  %p1891_p2 = scmp.lt.u32.totalorder %s1883_s15, %s2371_s23 }
 0x5a7   : > { %p1885_p3 = pnand %p1884_p13, %p2471_p5 }
 0x5a8   : > { %p1890_p1 = por %p1889_p9, %p1888_p0 }
 0x5a9   : > { %p1886_p12 = pneg %p1885_p3 }
 0x5aa   : > { %p1892_p7 = por %p1891_p2, %p1890_p1 }
 0x5ac   : > { %p1893_p4 = pnand %p1892_p7, %p1886_p12 }
 0x5ae   : > { %1896 = shalt.err (!%p1893_p4)
}
 0x5af   : > { %1651 = dma.vmem_to_hbm [thread:$0]  (%p2471_p5), %s2373_s28, 128, %s2371_s23, %s1305_s27  }
 0x5b0 PF: > { %s2474_s17 = sld [smem:[#allocation18_spill]]  ;;  %s2475_s13 = sld [smem:[#allocation21_spill]] }
 0x5b1   : > { %p2477_p11 = scmp.ge.s32.totalorder %s1963_s22, 2 }
 0x5b6   : > { %s1350_s16 = sand.u32 1, %s2474_s17   ;;  %p2476_p8 = scmp.ne.s32.totalorder %s2475_s13, 0 }
 0x5b7   : > { %s1351_s21 = scalar_lea.sflag [#allocation6], %s1350_s16 }
 0x5b8   : > { %p1667_p6 = pnand %p2477_p11, %p2476_p8 }
 0x5ba   : > { %1934 = dma.done.wait (!%p1667_p6), %s1351_s21, 128  }
 0x5bb   : > { %1936 = vsyncadd (!%p1667_p6), %s1351_s21, 4294967168  ;;  %s1360_s25 = scalar_lea.sflag [#allocation12], %s1350_s16 }
 0x5bc   : > { %1938 = dma.done.wait (!%p1667_p6), %s1360_s25, 128  }
 0x5bd   : > { %1940 = vsyncadd (!%p1667_p6), %s1360_s25, 4294967168  ;;  %s34_s22 = sadd.s32 1, %s1963_s22   ;;  %s2478_s10 = sld [smem:[#allocation19_spill]] }
 0x5be   : > { %p31_p10 = scmp.ge.s32.totalorder %s34_s22, 4   ;;  %s2479_s19 = sld [smem:[#allocation24_spill]] }
 0x5bf   : > { %s2480_s20 = sld [smem:[#allocation20_spill]]  ;;  %s2481_s21 = sld [smem:[#allocation22_spill]] }
 0x5c0   : > { %s2482_s17 = smov %s1947_s18  ;;  %33 = sbr.rel (!%p31_p10) target bundleno = 14 (0xe), region = 146 }
 0x5c3   : > { %s2483_s18 = smov %s2478_s10 }
 0x5c7   :  { %1365 = vsyncpa [#allocation5], 1 }
 0x5c8   :  { %1367 = vsyncpa [#allocation5 + $0x1], 1 }
 0x5c9   :  { %1368 = vsyncpa [#allocation8], 1 }
 0x5ca   :  { %1370 = vsyncpa [#allocation8 + $0x1], 1 }
 0x5cb   :  { %1371 = vsyncpa [#allocation6], 1 }
 0x5cc   :  { %1373 = vsyncpa [#allocation6 + $0x1], 1 }
 0x5cd   :  { %1374 = vsyncpa [#allocation12], 1 }
 0x5ce   :  { %1376 = vsyncpa [#allocation12 + $0x1], 1 }

</bundles_post_ra>
